<compile_context>
chip_gen: v7x
topology: tpu7x:2x2x1
jax: 0.10.0
libtpu: 0.0.40
codegen_flags: <defaults>
</compile_context>

<pallas_src>
import jax
import jax.numpy as jnp
from jax.experimental import pallas as pl
from jax.experimental.pallas import tpu as pltpu

EMB_SZS = [(24, 12), (2, 1), (7, 4)]   # (num_embeddings, embedding_dim)
N_CAT = len(EMB_SZS)                   # 3
N_EMB = sum(nf for _, nf in EMB_SZS)   # 17
N_CONT = 6
N_IN = N_EMB + N_CONT                  # 23
LAYERS = [200, 100]
OUT_SZ = 1
BN_EPS = 1e-5


def _round_up(x, m):
    return ((x + m - 1) // m) * m


def _cdiv(a, b):
    return (a + b - 1) // b


# Fused layer-1 activation layout (single contraction dim):
#   lanes [0, 6)        : bn-folded continuous features
#   lanes [6, 30)       : one-hot of x_cat[:, 0]   (vocab 24)
#   lanes [30, 32)      : one-hot of x_cat[:, 1]   (vocab 2)
#   lanes [32, 39)      : one-hot of x_cat[:, 2]   (vocab 7)
_LANE_OFF = []
_off = N_CONT
for _ni, _ in EMB_SZS:
    _LANE_OFF.append(_off)
    _off += _ni
K_ACT = _round_up(_off, 8)             # 40 (lane 39 is always zero)

H1 = LAYERS[0]                         # 200
H2 = LAYERS[1]                         # 100
H1P = _round_up(H1, 128)               # 256  (MXU-friendly)
H2P = _round_up(H2, 128)               # 128


def _make_kernel(mm_dtype):
    """mm_dtype: dtype of the MXU operands (bf16 fast path, f32 exact path)."""

    def tabular_mlp_kernel(xcat_ref, xcont_ref,
                           w1_ref, b1_ref,
                           w2_ref, b2_ref,
                           w3_ref, b3_ref,
                           out_ref):
        tb = xcat_ref.shape[0]

        # One-hot over the 3 categorical columns, built from a single lane
        # iota.  The offsets are added to the small (tb, 1) x_cat slices
        # (cheap VPU work) instead of shifting the (tb, K_ACT) iota per table.
        lane = jax.lax.broadcasted_iota(jnp.int32, (tb, K_ACT), 1)
        hit = None
        for j, off in enumerate(_LANE_OFF):
            h = lane == (xcat_ref[:, j:j + 1] + off)
            hit = h if hit is None else (hit | h)

        # Continuous features already sit at lanes 0..5; widen to K_ACT lanes
        # (high zero-pad only -> no data movement) and merge with the one-hot.
        xc = jnp.pad(xcont_ref[...], ((0, 0), (0, K_ACT - N_CONT)))
        act = jnp.where(hit, jnp.float32(1.0), xc).astype(mm_dtype)   # (tb, 40)

        # Layer 1: embeddings + bn_cont folded into the stacked w1 / b1.
        h1 = jnp.dot(act, w1_ref[...],
                     preferred_element_type=jnp.float32) + b1_ref[...]
        h1 = jnp.maximum(h1, 0.0)                                     # (tb, 256)

        # Layer 2: BN1 folded into w2 / b2.
        h2 = jnp.dot(h1.astype(mm_dtype), w2_ref[...],
                     preferred_element_type=jnp.float32) + b2_ref[...]
        h2 = jnp.maximum(h2, 0.0)                                     # (tb, 128)

        # Final 1-wide layer (BN2 folded): VPU mul + lane reduce in f32
        # (avoids an N=1 matmul).
        out_ref[...] = (jnp.sum(h2 * w3_ref[...], axis=-1, keepdims=True)
                        + b3_ref[...])                                # (tb, 1)

    return tabular_mlp_kernel


def init_params(key):
    """Deterministic synthetic parameters matching the module's shapes."""
    keys = jax.random.split(key, 16)
    p = {}
    p["emb"] = [jax.random.normal(keys[i], (ni, nf), jnp.float32) * 0.1
                for i, (ni, nf) in enumerate(EMB_SZS)]
    p["bnc_gamma"] = jnp.ones((N_CONT,), jnp.float32)
    p["bnc_beta"] = jnp.zeros((N_CONT,), jnp.float32)
    p["bnc_mean"] = jax.random.normal(keys[3], (N_CONT,), jnp.float32) * 0.1
    p["bnc_var"] = jnp.ones((N_CONT,), jnp.float32)
    dims = [N_IN] + LAYERS + [OUT_SZ]
    ws, bs = [], []
    for li in range(len(dims) - 1):
        fan_in = dims[li]
        ws.append(jax.random.normal(keys[4 + 2 * li], (dims[li], dims[li + 1]),
                                    jnp.float32) * (1.0 / jnp.sqrt(fan_in)))
        bs.append(jax.random.normal(keys[5 + 2 * li], (dims[li + 1],),
                                    jnp.float32) * 0.01)
    p["w"], p["b"] = ws, bs
    for j, h in enumerate(LAYERS):
        p[f"bn{j}_gamma"] = jnp.ones((h,), jnp.float32)
        p[f"bn{j}_beta"] = jnp.zeros((h,), jnp.float32)
        p[f"bn{j}_mean"] = jax.random.normal(keys[10 + j], (h,), jnp.float32) * 0.1
        p[f"bn{j}_var"] = jnp.ones((h,), jnp.float32) + 0.1
    return p


def _fold_bn(gamma, beta, mean, var):
    scale = gamma / jnp.sqrt(var + BN_EPS)
    bias = beta - mean * scale
    return scale, bias


def _pad2(a, rows, cols):
    return jnp.pad(a, ((0, rows - a.shape[0]), (0, cols - a.shape[1])))


def _pick_tile(B, tile_b):
    """Batch tile: big enough to amortize per-step overhead, >=2 grid steps for
    non-tiny batches (keeps both v7x TensorCores busy), multiple of 256 for
    large batches (MXU M-granularity on v6e/v7x)."""
    b8 = _round_up(max(B, 8), 8)
    if b8 <= 16:
        return b8
    if b8 <= 512:
        return _round_up(_cdiv(b8, 2), 8)
    tile_b = _round_up(max(tile_b, 256), 256)
    return max(256, min(tile_b, _round_up(_cdiv(b8, 2), 256)))


def tabular_forward(params, x_cat, x_cont, tile_b=2048, use_bf16=True):
    """Eval-mode forward. Handles arbitrary batch sizes via padding."""
    B = x_cat.shape[0]
    tile = _pick_tile(B, tile_b)
    B_pad = _round_up(B, tile)

    x_cat = x_cat.astype(jnp.int32)
    x_cont = x_cont.astype(jnp.float32)
    if B_pad != B:
        x_cat = jnp.pad(x_cat, ((0, B_pad - B), (0, 0)))    # index 0 is valid
        x_cont = jnp.pad(x_cont, ((0, B_pad - B), (0, 0)))

    # ---- Fold everything into the Linear weights (eval-mode exact) ----
    cs, cb = _fold_bn(params["bnc_gamma"], params["bnc_beta"],
                      params["bnc_mean"], params["bnc_var"])
    g1, be1 = _fold_bn(params["bn0_gamma"], params["bn0_beta"],
                       params["bn0_mean"], params["bn0_var"])
    g2, be2 = _fold_bn(params["bn1_gamma"], params["bn1_beta"],
                       params["bn1_mean"], params["bn1_var"])
    W1, W2, W3 = params["w"]
    b1, b2, b3 = params["b"]

    W1_emb = W1[:N_EMB]                      # (17, 200)
    W1_cont = W1[N_EMB:]                     # (6, 200)

    # Embedding tables folded into layer-1: one-hot @ (E @ W1_emb_slice).
    pieces, col = [], 0
    for ei, (_, nf) in enumerate(EMB_SZS):
        pieces.append(params["emb"][ei] @ W1_emb[col:col + nf])
        col += nf
    T = jnp.concatenate(pieces, axis=0)      # (33, 200)
    Wc = cs[:, None] * W1_cont               # (6, 200)  bn_cont scale folded
    b1f = b1 + cb @ W1_cont                  # (200,)    bn_cont bias folded
    # Stacked layer-1 weight, rows ordered [cont(6) | one-hot(33)] to match
    # the in-kernel activation layout -> single merged matmul.
    W1s = jnp.concatenate([Wc, T], axis=0)   # (39, 200)

    W2f = g1[:, None] * W2                   # (200, 100) BN1 folded
    b2f = b2 + be1 @ W2                      # (100,)
    W3f = g2[:, None] * W3                   # (100, 1)   BN2 folded
    b3f = b3 + be2 @ W3                      # (1,)

    # ---- Pad to MXU-friendly widths; matmul weights in bf16 (fast path) ----
    mm_dtype = jnp.bfloat16 if use_bf16 else jnp.float32
    w1p = _pad2(W1s, K_ACT, H1P).astype(mm_dtype)     # (40, 256)
    b1p = _pad2(b1f[None, :], 1, H1P)                 # (1, 256)  f32
    w2p = _pad2(W2f, H1P, H2P).astype(mm_dtype)       # (256, 128)
    b2p = _pad2(b2f[None, :], 1, H2P)                 # (1, 128)  f32
    w3row = _pad2(W3f[:, 0][None, :], 1, H2P)         # (1, 128)  f32 (VPU)
    b3p = b3f.reshape(1, 1)                           # (1, 1)    f32

    grid = (B_pad // tile,)
    full2 = lambda a: pl.BlockSpec(a.shape, lambda i: (0, 0))

    flops = 2 * B_pad * (K_ACT * H1P + H1P * H2P + H2P)
    weight_bytes = ((w1p.size + w2p.size) * w1p.dtype.itemsize
                    + 4 * (b1p.size + b2p.size + w3row.size + b3p.size))
    bytes_acc = B_pad * (N_CAT * 4 + N_CONT * 4 + OUT_SZ * 4) + int(weight_bytes)

    # ~4.5 KB/row upper bound: double-buffered lane-padded I/O blocks + in-kernel
    # temps (act/h1/h2).  Only set vmem_limit_bytes when we'd exceed v5e's
    # 16 MiB default scoped limit; cap at 64 MiB for v7x headroom.
    cp_kwargs = dict(dimension_semantics=("parallel",))
    est_vmem = tile * 4608 + 2 * int(weight_bytes)
    if est_vmem > 12 * 1024 * 1024:
        cp_kwargs["vmem_limit_bytes"] = int(min(2 * est_vmem, 64 * 1024 * 1024))

    out = pl.pallas_call(
        _make_kernel(mm_dtype),
        out_shape=jax.ShapeDtypeStruct((B_pad, OUT_SZ), jnp.float32),
        grid=grid,
        in_specs=[
            pl.BlockSpec((tile, N_CAT), lambda i: (i, 0)),    # x_cat block
            pl.BlockSpec((tile, N_CONT), lambda i: (i, 0)),   # x_cont block
            full2(w1p), full2(b1p),
            full2(w2p), full2(b2p),
            full2(w3row), full2(b3p),
        ],
        out_specs=pl.BlockSpec((tile, OUT_SZ), lambda i: (i, 0)),
        compiler_params=pltpu.CompilerParams(**cp_kwargs),
        cost_estimate=pl.CostEstimate(
            flops=int(flops), transcendentals=0,
            bytes_accessed=int(bytes_acc)),
    )(x_cat, x_cont, w1p, b1p, w2p, b2p, w3row, b3p)

    return out[:B]


def reference_forward(params, x_cat, x_cont):
    """Pure-JAX eval-mode reference (mirrors the PyTorch forward)."""
    embs = [params["emb"][i][x_cat[:, i]] for i in range(len(EMB_SZS))]
    x = jnp.concatenate(embs, axis=1)
    cs, cb = _fold_bn(params["bnc_gamma"], params["bnc_beta"],
                      params["bnc_mean"], params["bnc_var"])
    xc = x_cont * cs + cb
    h = jnp.concatenate([x, xc], axis=1)
    for j in range(len(LAYERS)):
        h = jnp.maximum(h @ params["w"][j] + params["b"][j], 0.0)
        g, be = _fold_bn(params[f"bn{j}_gamma"], params[f"bn{j}_beta"],
                         params[f"bn{j}_mean"], params[f"bn{j}_var"])
        h = h * g + be
    return h @ params["w"][-1] + params["b"][-1]


if __name__ == "__main__":
    key = jax.random.PRNGKey(0)
    pkey, k_cat0, k_cat1, k_cat2, k_cont = jax.random.split(key, 5)

    params = init_params(pkey)

    B = 16
    x_cat = jnp.stack(
        [jax.random.randint(k_cat0, (B,), 0, EMB_SZS[0][0]),
         jax.random.randint(k_cat1, (B,), 0, EMB_SZS[1][0]),
         jax.random.randint(k_cat2, (B,), 0, EMB_SZS[2][0])],
        axis=1).astype(jnp.int32)                                  # (16, 3)
    x_cont = jax.random.normal(k_cont, (B, N_CONT), jnp.float32)   # (16, 6)

    ref = reference_forward(params, x_cat, x_cont)

    # Fast path: bf16 MXU operands, f32 accumulation/epilogue.
    out = tabular_forward(params, x_cat, x_cont)
    out = jax.block_until_ready(out)
    assert out.shape == (B, OUT_SZ)
    # bf16 operand rounding -> looser tolerance (accumulation stays f32).
    assert jnp.allclose(out, ref, atol=3e-2, rtol=3e-2), \
        float(jnp.max(jnp.abs(out - ref)))

    # Exact path: same kernel with f32 matmul operands, tight tolerance.
    out_f32 = jax.block_until_ready(
        tabular_forward(params, x_cat, x_cont, use_bf16=False))
    assert jnp.allclose(out_f32, ref, atol=1e-3, rtol=1e-3), \
        float(jnp.max(jnp.abs(out_f32 - ref)))

    print("KERNEL_OK")
</pallas_src>

<mosaic_0001>
module attributes {stable_mosaic.version = 11 : i64} {
  func.func @tabular_mlp_kernel(%arg0: i32, %arg1: memref<16x3xi32, #tpu.memory_space<vmem>>, %arg2: memref<16x6xf32, #tpu.memory_space<vmem>>, %arg3: memref<40x256xbf16, #tpu.memory_space<vmem>>, %arg4: memref<1x256xf32, #tpu.memory_space<vmem>>, %arg5: memref<256x128xbf16, #tpu.memory_space<vmem>>, %arg6: memref<1x128xf32, #tpu.memory_space<vmem>>, %arg7: memref<1x128xf32, #tpu.memory_space<vmem>>, %arg8: memref<1x1xf32, #tpu.memory_space<vmem>>, %arg9: memref<16x1xf32, #tpu.memory_space<vmem>>) attributes {dimension_semantics = [#tpu.dimension_semantics<parallel>], iteration_bounds = array<i64: 1>, scalar_prefetch = 0 : i64, scratch_operands = 0 : i64, tpu.core_type = #tpu.core_type<tc>, window_params = [{transform_indices = @transform_0, window_bounds = array<i64: 16, 3>}, {transform_indices = @transform_1, window_bounds = array<i64: 16, 6>}, {pipeline_mode = #tpu.pipeline_mode<synchronous>, transform_indices = @transform_2, window_bounds = array<i64: 40, 256>}, {pipeline_mode = #tpu.pipeline_mode<synchronous>, transform_indices = @transform_3, window_bounds = array<i64: 1, 256>}, {pipeline_mode = #tpu.pipeline_mode<synchronous>, transform_indices = @transform_4, window_bounds = array<i64: 256, 128>}, {pipeline_mode = #tpu.pipeline_mode<synchronous>, transform_indices = @transform_5, window_bounds = array<i64: 1, 128>}, {pipeline_mode = #tpu.pipeline_mode<synchronous>, transform_indices = @transform_6, window_bounds = array<i64: 1, 128>}, {pipeline_mode = #tpu.pipeline_mode<synchronous>, transform_indices = @transform_7, window_bounds = array<i64: 1, 1>}, {transform_indices = @transform_8, window_bounds = array<i64: 16, 1>}]} {
    %0 = tpu.iota {dimensions = array<i32: 1>} : vector<16x40xi32>
    %c0 = arith.constant 0 : index
    %c0_0 = arith.constant 0 : index
    %1 = vector.load %arg1[%c0, %c0_0] : memref<16x3xi32, #tpu.memory_space<vmem>>, vector<16x1xi32>
    %c6_i32 = arith.constant 6 : i32
    %2 = vector.broadcast %c6_i32 : i32 to vector<16x1xi32>
    %3 = arith.addi %1, %2 : vector<16x1xi32>
    %4 = vector.broadcast %3 : vector<16x1xi32> to vector<16x40xi32>
    %5 = arith.cmpi eq, %0, %4 : vector<16x40xi32>
    %c0_1 = arith.constant 0 : index
    %c1 = arith.constant 1 : index
    %6 = vector.load %arg1[%c0_1, %c1] : memref<16x3xi32, #tpu.memory_space<vmem>>, vector<16x1xi32>
    %c30_i32 = arith.constant 30 : i32
    %7 = vector.broadcast %c30_i32 : i32 to vector<16x1xi32>
    %8 = arith.addi %6, %7 : vector<16x1xi32>
    %9 = vector.broadcast %8 : vector<16x1xi32> to vector<16x40xi32>
    %10 = arith.cmpi eq, %0, %9 : vector<16x40xi32>
    %11 = arith.ori %5, %10 : vector<16x40xi1>
    %c0_2 = arith.constant 0 : index
    %c2 = arith.constant 2 : index
    %12 = vector.load %arg1[%c0_2, %c2] : memref<16x3xi32, #tpu.memory_space<vmem>>, vector<16x1xi32>
    %c32_i32 = arith.constant 32 : i32
    %13 = vector.broadcast %c32_i32 : i32 to vector<16x1xi32>
    %14 = arith.addi %12, %13 : vector<16x1xi32>
    %15 = vector.broadcast %14 : vector<16x1xi32> to vector<16x40xi32>
    %16 = arith.cmpi eq, %0, %15 : vector<16x40xi32>
    %17 = arith.ori %11, %16 : vector<16x40xi1>
    %c0_3 = arith.constant 0 : index
    %c0_4 = arith.constant 0 : index
    %18 = vector.load %arg2[%c0_3, %c0_4] : memref<16x6xf32, #tpu.memory_space<vmem>>, vector<16x6xf32>
    %c0_i32 = arith.constant 0 : i32
    %19 = arith.sitofp %c0_i32 : i32 to f32
    %20 = vector.broadcast %19 : f32 to vector<16x34xf32>
    %21 = tpu.concatenate %18, %20 in 1 : vector<16x6xf32>, vector<16x34xf32> -> vector<16x40xf32>
    %cst = arith.constant 1.000000e+00 : f32
    %22 = vector.broadcast %cst : f32 to vector<16x40xf32>
    %23 = arith.select %17, %22, %21 : vector<16x40xi1>, vector<16x40xf32>
    %24 = arith.truncf %23 : vector<16x40xf32> to vector<16x40xbf16>
    %c0_5 = arith.constant 0 : index
    %c0_6 = arith.constant 0 : index
    %25 = vector.load %arg3[%c0_5, %c0_6] : memref<40x256xbf16, #tpu.memory_space<vmem>>, vector<40x256xbf16>
    %cst_7 = arith.constant dense<0.000000e+00> : vector<16x256xf32>
    %26 = tpu.matmul %24, %25, %cst_7 {dimension_numbers = #tpu.dot_dimension_numbers<[1], [0], [0], [1], [0, 0, 1, 1], [], []>} : vector<16x40xbf16>, vector<40x256xbf16>, vector<16x256xf32> -> vector<16x256xf32>
    %c0_8 = arith.constant 0 : index
    %c0_9 = arith.constant 0 : index
    %27 = vector.load %arg4[%c0_8, %c0_9] : memref<1x256xf32, #tpu.memory_space<vmem>>, vector<1x256xf32>
    %28 = vector.broadcast %27 : vector<1x256xf32> to vector<16x256xf32>
    %29 = arith.addf %26, %28 : vector<16x256xf32>
    %cst_10 = arith.constant 0.000000e+00 : f32
    %30 = vector.broadcast %cst_10 : f32 to vector<16x256xf32>
    %31 = arith.maximumf %29, %30 : vector<16x256xf32>
    %32 = arith.truncf %31 : vector<16x256xf32> to vector<16x256xbf16>
    %c0_11 = arith.constant 0 : index
    %c0_12 = arith.constant 0 : index
    %33 = vector.load %arg5[%c0_11, %c0_12] : memref<256x128xbf16, #tpu.memory_space<vmem>>, vector<256x128xbf16>
    %cst_13 = arith.constant dense<0.000000e+00> : vector<16x128xf32>
    %34 = tpu.matmul %32, %33, %cst_13 {dimension_numbers = #tpu.dot_dimension_numbers<[1], [0], [0], [1], [0, 0, 1, 1], [], []>} : vector<16x256xbf16>, vector<256x128xbf16>, vector<16x128xf32> -> vector<16x128xf32>
    %c0_14 = arith.constant 0 : index
    %c0_15 = arith.constant 0 : index
    %35 = vector.load %arg6[%c0_14, %c0_15] : memref<1x128xf32, #tpu.memory_space<vmem>>, vector<1x128xf32>
    %36 = vector.broadcast %35 : vector<1x128xf32> to vector<16x128xf32>
    %37 = arith.addf %34, %36 : vector<16x128xf32>
    %cst_16 = arith.constant 0.000000e+00 : f32
    %38 = vector.broadcast %cst_16 : f32 to vector<16x128xf32>
    %39 = arith.maximumf %37, %38 : vector<16x128xf32>
    %c0_17 = arith.constant 0 : index
    %c0_18 = arith.constant 0 : index
    %40 = vector.load %arg7[%c0_17, %c0_18] : memref<1x128xf32, #tpu.memory_space<vmem>>, vector<1x128xf32>
    %41 = vector.broadcast %40 : vector<1x128xf32> to vector<16x128xf32>
    %42 = arith.mulf %39, %41 : vector<16x128xf32>
    %cst_19 = arith.constant dense<0.000000e+00> : vector<16xf32>
    %43 = vector.multi_reduction <add>, %42, %cst_19 [1] : vector<16x128xf32> to vector<16xf32>
    %44 = vector.shape_cast %43 : vector<16xf32> to vector<16x1xf32>
    %c0_20 = arith.constant 0 : index
    %c0_21 = arith.constant 0 : index
    %45 = vector.load %arg8[%c0_20, %c0_21] : memref<1x1xf32, #tpu.memory_space<vmem>>, vector<1x1xf32>
    %46 = vector.broadcast %45 : vector<1x1xf32> to vector<16x1xf32>
    %47 = arith.addf %44, %46 : vector<16x1xf32>
    %c0_22 = arith.constant 0 : index
    %c0_23 = arith.constant 0 : index
    %48 = vector.load %arg9[%c0_22, %c0_23] : memref<16x1xf32, #tpu.memory_space<vmem>>, vector<16x1xf32>
    tpu.vector_store %arg9[%c0_22, %c0_23], %47 {strides = array<i32>} : memref<16x1xf32, #tpu.memory_space<vmem>>, vector<16x1xf32>,
    return
  }
  func.func @transform_0(%arg0: i32) -> (i32, i32) {
    %c0_i32 = arith.constant 0 : i32
    %c0_i32_0 = arith.constant 0 : i32
    return %arg0, %c0_i32 : i32, i32
  }
  func.func @transform_1(%arg0: i32) -> (i32, i32) {
    %c0_i32 = arith.constant 0 : i32
    %c0_i32_0 = arith.constant 0 : i32
    return %arg0, %c0_i32 : i32, i32
  }
  func.func @transform_2(%arg0: i32) -> (i32, i32) {
    %c0_i32 = arith.constant 0 : i32
    %c0_i32_0 = arith.constant 0 : i32
    %c0_i32_1 = arith.constant 0 : i32
    return %c0_i32, %c0_i32_0 : i32, i32
  }
  func.func @transform_3(%arg0: i32) -> (i32, i32) {
    %c0_i32 = arith.constant 0 : i32
    %c0_i32_0 = arith.constant 0 : i32
    %c0_i32_1 = arith.constant 0 : i32
    return %c0_i32, %c0_i32_0 : i32, i32
  }
  func.func @transform_4(%arg0: i32) -> (i32, i32) {
    %c0_i32 = arith.constant 0 : i32
    %c0_i32_0 = arith.constant 0 : i32
    %c0_i32_1 = arith.constant 0 : i32
    return %c0_i32, %c0_i32_0 : i32, i32
  }
  func.func @transform_5(%arg0: i32) -> (i32, i32) {
    %c0_i32 = arith.constant 0 : i32
    %c0_i32_0 = arith.constant 0 : i32
    %c0_i32_1 = arith.constant 0 : i32
    return %c0_i32, %c0_i32_0 : i32, i32
  }
  func.func @transform_6(%arg0: i32) -> (i32, i32) {
    %c0_i32 = arith.constant 0 : i32
    %c0_i32_0 = arith.constant 0 : i32
    %c0_i32_1 = arith.constant 0 : i32
    return %c0_i32, %c0_i32_0 : i32, i32
  }
  func.func @transform_7(%arg0: i32) -> (i32, i32) {
    %c0_i32 = arith.constant 0 : i32
    %c0_i32_0 = arith.constant 0 : i32
    %c0_i32_1 = arith.constant 0 : i32
    return %c0_i32, %c0_i32_0 : i32, i32
  }
  func.func @transform_8(%arg0: i32) -> (i32, i32) {
    %c0_i32 = arith.constant 0 : i32
    %c0_i32_0 = arith.constant 0 : i32
    return %arg0, %c0_i32 : i32, i32
  }
}

</mosaic_0001>

<bundles_post_ra>
// kernel: tpu_custom_call.1
= control target key start
LH: loop header
LB: loop body
LE: loop exit
PB: predicated region body
PF: predicated region fallthrough
CT: control target
= control target key end

     0   :  { %s617_s0 = inlined_call_operand.vmem [shape: s32[16,3], index: 0, kind: input, shape index: {}]   ;;  %s618_s1 = inlined_call_operand.vmem [shape: f32[16,6], index: 1, kind: input, shape index: {}]   ;;  %s619_s2 = inlined_call_operand.vmem [shape: bf16[40,256], index: 2, kind: input, shape index: {}]   ;;  %s620_s3 = inlined_call_operand.vmem [shape: f32[1,256], index: 3, kind: input, shape index: {}]   ;;  %s621_s4 = inlined_call_operand.hbm [shape: bf16[256,128], index: 4, kind: input, shape index: {}]   ;;  %s622_s5 = inlined_call_operand.vmem [shape: f32[1,128], index: 5, kind: input, shape index: {}]   ;;  %s623_s6 = inlined_call_operand.vmem [shape: f32[1,128], index: 6, kind: input, shape index: {}]   ;;  %s624_s7 = inlined_call_operand.<no memory space> [shape: f32[1,1], index: 7, kind: input, shape index: {}]   ;;  %s625_s8 = inlined_call_operand.vmem [shape: f32[16,1], index: 8, kind: output, shape index: {}]  }
   0x1   :  { %v13_v0 = vstv %s624_s7 }
   0x2   :  { %14 = vst [vmem:[#allocation2] sm:$0x1] %v13_v0 }
   0x3   :  { %15 = vsyncpa [#allocation4], 0  ;;  %s509_s29 = smov [#allocation3]   ;;  %s485_s11 = scalar_lea.hbm %s621_s4, 2048 }
   0x4   :  { %s29_s30 = sshll.u32 %s509_s29, 4  ;;  %p486_p0 = scmp.ne.s32.totalorder %s621_s4, %s485_s11  ;;  %s30_s30 = int_to_ptr.vmem [resolvable:$true] %s29_s30 }
   0x5   :  { %p489_p1 = scmp.lt.u32.totalorder %s485_s11, %s621_s4 }
   0x7   :  { %p491_p2 = pnand %p489_p1, %p486_p0 }
   0x9   :  { %494 = shalt.err (!%p491_p2)
}
   0xa   :  { %s495_s7 = scalar_lea.vmem %s30_s30, 2048  ;;  %p500_p4 = scmp.lt.s32.totalorder %s30_s30, %s30_s30 }
   0xb   :  { %p496_p3 = scmp.ne.s32.totalorder %s30_s30, %s495_s7  ;;  %p501_p5 = scmp.lt.s32.totalorder %s495_s7, %s495_s7 }
   0xd   :  { %p502_p6 = por %p501_p5, %p500_p4 }
   0xf   :  { %p503_p7 = pnand %p502_p6, %p496_p3 }
  0x11   :  { %506 = shalt.err (!%p503_p7)
}
  0x12   :  { %s510_s16 = smov 64   ;;  %s511_s17 = smov 4  }
  0x13   :  { %35 = dma.hbm_to_vmem [thread:$0]  %s621_s4, 2048, %s30_s30, [#allocation4], %s510_s16, %s510_s16, %s511_s17  }
  0x14   :  { %507 = dma.done.wait [#allocation4], 2048  }
  0x15   :  { %508 = vsyncadd [#allocation4], 4294965248  ;;  %v512_v1 = vmov 1   ;;  %v513_v2 = vmov 0   ;;  %v48_v3 = vld [vmem:[%s617_s0] sm:$0xff]  ;;  %v49_v4 = vld [vmem:[%s617_s0 + $0x8] sm:$0xff]  ;;  %v46_v31 = vlaneseq }
  0x16   :  { %458 = vset.pattern.permute.xlu1 %v512_v1  ;;  %457 = vset.pattern.permute.xlu0 %v513_v2  ;;  %v60_v5 = vadd.s32 30, %v48_v3  ;;  %v50_v6 = vadd.s32 6, %v48_v3  ;;  %v61_v7 = vadd.s32 30, %v49_v4  ;;  %v51_v8 = vadd.s32 6, %v49_v4  ;;  %v461_v9 = vld [vmem:[%s619_s2 + $0x4] ss:$8 sps:$4 sm:$0xff]  }
  0x17   :  { %177 = vmatprep.mubr.bf16.mxu0 %v513_v2  ;;  %v463_v10 = vld [vmem:[%s619_s2] ss:$8 sps:$4 sm:$0xff]   ;;  %145 = vmatprep.subr.bf16.mxu0 %v461_v9  ;;  %v464_v11 = vld [vmem:[%s619_s2 + $0x14] ss:$8 sps:$4 sm:$0xff]   ;;  %v73_v12 = vadd.s32 32, %v49_v4  ;;  %v72_v13 = vadd.s32 32, %v48_v3 }
  0x18   :  { %63 = vperm.xlu1 %458, %v60_v5   ;;  %53 = vperm.xlu0 %457, %v50_v6   ;;  %v466_v14 = vld [vmem:[%s619_s2 + $0x10] ss:$8 sps:$4 sm:$0xff]   ;;  %v514_v15 = vmov 2   ;;  %v96_v16 = vld [vmem:[%s619_s2 + $0x20] sm:$0xff]  ;;  %vm138_vm0 = vcmask 1043456   ;;  %v47_v34 = vand.u32 127, %v46_v31 }
  0x19   :  { %146 = vmatpush1.bf16.msra.mxu0 %v463_v10  ;;  %v407_v17 = vcombine.high %v96_v16, %v96_v16  ;;  %v406_v18 = vcombine.low %v96_v16, %v96_v16  ;;  %v469_v20 = vld [vmem:[#allocation3 + $0x40] sm:$0xff]   ;;  %v471_v22 = vld [vmem:[#allocation3 + $0x48] sm:$0xff]   ;;  %v473_v24 = vld [vmem:[#allocation3 + $0x50] sm:$0xff]   ;;  %vm86_vm3 = vcmask 48128   ;;  %vm134_vm12 = vcmask 326656  }
  0x1a   :  { %147 = vmatprep.subr.bf16.mxu0 %v464_v11  ;;  %v470_v21 = vld [vmem:[#allocation3] sm:$0xff]   ;;  %429 = vmatprep.subr.bf16.mxu1 %v469_v20  ;;  %v472_v23 = vld [vmem:[#allocation3 + $0x8] sm:$0xff]   ;;  %v474_v25 = vld [vmem:[#allocation3 + $0x10] sm:$0xff]   ;;  %v100_v51 = vshrl.u32 %v46_v31, 7  ;;  %vm394_vm13 = vcmask 7168  }
  0x1b   :  { %v140_v19 = vsel %vm138_vm0, %v406_v18, 0  ;;  %430 = vmatpush3.bf16.msra.mxu1 %v470_v21  ;;  %v475_v26 = vld [vmem:[#allocation3 + $0x58] sm:$0xff]   ;;  %v477_v28 = vld [vmem:[#allocation3 + $0x60] sm:$0xff]   ;;  %v479_v30 = vld [vmem:[#allocation3 + $0x68] sm:$0xff]  }
  0x1c   :  { %66 = vperm.xlu1 %458, %v61_v7   ;;  %56 = vperm.xlu0 %457, %v51_v8   ;;  %v476_v27 = vld [vmem:[#allocation3 + $0x18] sm:$0xff]   ;;  %v478_v29 = vld [vmem:[#allocation3 + $0x20] sm:$0xff]   ;;  %v480_v46 = vld [vmem:[#allocation3 + $0x28] sm:$0xff]   ;;  %v101_v52 = vsub.s32 0, %v100_v51  ;;  %v105_v54 = vsub.s32 1, %v100_v51 }
  0x1d   :  { %148 = vmatpush1.bf16.msra.mxu0 %v466_v14  ;;  %431 = vmatprep.subr.bf16.mxu1 %v471_v22  ;;  %v85_v37 = vld [vmem:[%s618_s1 + $0x8] sm:$0xff]  ;;  %v84_v38 = vld [vmem:[%s618_s1] sm:$0xff]  ;;  %v481_v47 = vld [vmem:[#allocation3 + $0x70] sm:$0xff]  }
  0x1e   :  { %408 = vmatprep.subr.msk.bf16.mxu0 %vm138_vm0, %v407_v17  ;;  %v88_v39 = vsel %vm86_vm3, %v85_v37, 0.0  ;;  %v87_v42 = vsel %vm86_vm3, %v84_v38, 0.0  ;;  %v482_v48 = vld [vmem:[#allocation3 + $0x30] sm:$0xff]   ;;  %v483_v49 = vld [vmem:[#allocation3 + $0x78] sm:$0xff]  }
  0x1f   :  { %432 = vmatpush3.bf16.msra.mxu1 %v472_v23  ;;  %v484_v50 = vld [vmem:[#allocation3 + $0x38] sm:$0xff]  }
  0x20   :  { %460 = vset.pattern.permute.xlu1 %v514_v15  ;;  %459 = vset.pattern.permute.xlu0 %v514_v15  ;;  %v97_v53 = vld [vmem:[%s620_s3] sm:$0x3] }
  0x21   :  { %78 = vperm.xlu1 %460, %v73_v12   ;;  %75 = vperm.xlu0 %459, %v72_v13   ;;  %v102_v55 = vrot.slane %v97_v53, %v101_v52  ;;  %v106_v56 = vrot.slane %v97_v53, %v105_v54  ;;  %v410_v8 = vld [vmem:[%s622_s5] ss:$0 sm:$0xff] }
  0x22   :  { %150 = vmatpush1.bf16.msra.mxu0 %v140_v19  ;;  %433 = vmatprep.subr.bf16.mxu1 %v473_v24  ;;  %v427_v15 = vld [vmem:[%s623_s6] ss:$0 sm:$0xff] }
  0x23   :  { %434 = vmatpush3.bf16.msra.mxu1 %v474_v25  ;;  %v428_v21 = vld [vmem:[#allocation2] ss:$0 sm:$0xff] }
  0x24   :  { %435 = vmatprep.subr.bf16.mxu1 %v475_v26 }
  0x27   :  { %436 = vmatpush3.bf16.msra.mxu1 %v476_v27 }
  0x28   :  { %437 = vmatprep.subr.bf16.mxu1 %v477_v28 }
  0x2b   :  { %438 = vmatpush3.bf16.msra.mxu1 %v478_v29 }
  0x2c   :  { %439 = vmatprep.subr.bf16.mxu1 %v479_v30 }
  0x2f   :  { %440 = vmatpush3.bf16.msra.mxu1 %v480_v46 }
  0x30   :  { %441 = vmatprep.subr.bf16.mxu1 %v481_v47 }
  0x33   :  { %442 = vmatpush3.bf16.msra.mxu1 %v482_v48 }
  0x34   :  { %443 = vmatprep.subr.bf16.mxu1 %v483_v49 }
  0x37   :  { %444 = vmatpush3.bf16.msra.mxu1 %v484_v50 }
  0x97   :  { %v64_v32 = vpop.permute.xlu1 %63  ;;  %v54_v33 = vpop.permute.xlu0 %53 }
  0x98   :  { %vm68_vm1 = vcmp.eq.s32.totalorder %v47_v34, %v64_v32  ;;  %vm58_vm2 = vcmp.eq.s32.totalorder %v47_v34, %v54_v33 }
  0x99   :  { %vm70_vm6 = vmor %vm58_vm2, %vm68_vm1 }
  0x9b   :  { %v67_v35 = vpop.permute.xlu1 %66  ;;  %v57_v36 = vpop.permute.xlu0 %56 }
  0x9c   :  { %vm69_vm4 = vcmp.eq.s32.totalorder %v47_v34, %v67_v35  ;;  %vm59_vm5 = vcmp.eq.s32.totalorder %v47_v34, %v57_v36 }
  0x9d   :  { %vm71_vm7 = vmor %vm59_vm5, %vm69_vm4 }
  0xa0   :  { %v79_v40 = vpop.permute.xlu1 %78  ;;  %v76_v41 = vpop.permute.xlu0 %75 }
  0xa1   :  { %vm81_vm8 = vcmp.eq.s32.totalorder %v47_v34, %v79_v40  ;;  %vm80_vm9 = vcmp.eq.s32.totalorder %v47_v34, %v76_v41 }
  0xa2   :  { %vm83_vm10 = vmor %vm71_vm7, %vm81_vm8 }
  0xa3   :  { %v90_v43 = vsel %vm83_vm10, 1.0, %v88_v39  ;;  %vm82_vm11 = vmor %vm70_vm6, %vm80_vm9 }
  0xa4   :  { %v89_v44 = vsel %vm82_vm11, 1.0, %v87_v42 }
  0xa5   :  { %v91_v45 = vpack.c.bf16 %v90_v43, %v89_v44 }
  0xa7   :  { %409 = vmatmul.mubr.msk.bf16.vlgmr.msra.gmra.mrb[0].mxu0 %vm134_vm12, %v91_v45 }
 0x17a   :  { %v179_v57 = vpop.f32.mrb[0].mxu0 }
 0x17b   :  { %v180_v58 = vadd.f32 %v179_v57, %v102_v55  ;;  %v181_v59 = vpop.f32.mrb[1].mxu0 }
 0x17c   :  { %v182_v60 = vadd.f32 %v181_v59, %v106_v56  ;;  %v183_v61 = vpop.f32.mrb[2].mxu0 }
 0x17d   :  { %v184_v62 = vadd.f32 %v183_v61, %v102_v55  ;;  %v185_v63 = vpop.f32.mrb[3].mxu0  ;;  %v188_v1 = vmax.f32 %v180_v58, 0.0 }
 0x17e   :  { %v186_v0 = vadd.f32 %v185_v63, %v106_v56  ;;  %v189_v3 = vmax.f32 %v182_v60, 0.0 }
 0x17f   :  { %v190_v2 = vmax.f32 %v184_v62, 0.0 }
 0x180   :  { %v191_v4 = vmax.f32 %v186_v0, 0.0 }
 0x181   :  { %v192_v5 = vpack.c.bf16 %v190_v2, %v188_v1 }
 0x182   :  { %v193_v6 = vpack.c.bf16 %v191_v4, %v189_v3 }
 0x184   :  { %361 = vmatprep.mubr.bf16.mxu1 %v193_v6 }
 0x185   :  { %362 = vmatmul.mubr.bf16.vlgmr.msra.gmra.mrb[0].mxu1 %v192_v5 }
 0x258   :  { %v445_v7 = vpop.f32.mrb[0].mxu1 }
 0x259   :  { %v446_v9 = vpop.f32.mrb[1].mxu1 }
 0x25a   :  { %v447_v10 = vadd.f32 %v446_v9, %v445_v7  ;;  %v448_v11 = vpop.f32.mrb[2].mxu1 }
 0x25b   :  { %v449_v12 = vpop.f32.mrb[3].mxu1 }
 0x25c   :  { %v364_v13 = vadd.f32 %v447_v10, %v410_v8  ;;  %v450_v14 = vadd.f32 %v449_v12, %v448_v11 }
 0x25e   :  { %v370_v16 = vmax.f32 %v364_v13, 0.0  ;;  %v367_v17 = vadd.f32 %v450_v14, %v410_v8 }
 0x260   :  { %v371_v18 = vmax.f32 %v367_v17, 0.0  ;;  %v379_v19 = vmul.f32 %v427_v15, %v370_v16 }
 0x262   :  { %381 = vadd.xlane.f32.xlu1 %v379_v19  ;;  %v380_v20 = vmul.f32 %v427_v15, %v371_v18 }
 0x264   :  { %383 = vadd.xlane.f32.xlu0 %v380_v20 }
 0x2ef   :  { %v382_v22 = vpop.xlane.xlu1 %381 }
 0x2f0   :  { %v392_v23 = vadd.f32 %v428_v21, %v382_v22 }
 0x2f1   :  { %v384_v24 = vpop.xlane.xlu0 %383 }
 0x2f2   :  { %395 = vst.msk [vmem:[%s625_s8] sm:$0xff] %vm394_vm13, %v392_v23  ;;  %v393_v25 = vadd.f32 %v428_v21, %v384_v24 }
 0x2f4   :  { %396 = vst.msk [vmem:[%s625_s8 + $0x8] sm:$0xff] %vm394_vm13, %v393_v25 }
 0x2f5   :  { %401 = vsyncpa [#allocation4], 1 }

</bundles_post_ra>
